<compile_context>
chip_gen: v7x
topology: tpu7x:2x2x1
jax: 0.10.0
libtpu: 0.0.40
codegen_flags: <defaults>
</compile_context>

<pallas_src>
import functools

import jax
import jax.numpy as jnp
from jax.experimental import pallas as pl
from jax.experimental.pallas import tpu as pltpu


# ------------------------------ fused kernel --------------------------------

def _fused_dyrelu_kernel(lam_ref, init_ref, q_ref, w1_ref, b1_ref,
                         w2t_ref, b2c_ref, x_ref, o_ref, *, k):
    # Block shapes seen by the kernel:
    #   lam/init : (2k,)        in SMEM (scalars)
    #   q        : (1, Dq, 1)   -> per-batch query column
    #   W1       : (Dq, Cr)
    #   b1       : (1, Cr)
    #   W2T      : (2k, C, Cr)  -> slot-major, channel-on-sublane
    #   b2c      : (2k, C, 1)
    #   x / out  : (1, C, T)    -> C on sublanes, spatial tile on lanes

    # ---- prologue: coefficient MLP (tiny, transpose-free) ----
    q_col = q_ref[0]                                           # (Dq, 1)
    # h[i] = relu( sum_d q[d] * W1[d, i] + b1[i] )  -> (1, Cr) row
    h_row = jnp.sum(w1_ref[...] * q_col, axis=0, keepdims=True) + b1_ref[...]
    h_row = jnp.maximum(h_row, 0.0)

    def coef(m):
        # z[c] = sum_r W2[r, c*2k + m] * h[r] + b2[c*2k + m]   -> (C, 1)
        z = jnp.sum(w2t_ref[m] * h_row, axis=1, keepdims=True) + b2c_ref[m]
        # 2*sigmoid(z) - 1 == tanh(z/2): one EUP op, no extra VPU mul/sub.
        return jnp.tanh(0.5 * z) * lam_ref[m] + init_ref[m]

    # Hoisted out of the max loop: each (C, 1) column is materialized once per
    # grid step, so the lane broadcast against the x tile happens exactly once
    # per coefficient.
    a_cols = [coef(m) for m in range(k)]          # slopes     (C, 1)
    b_cols = [coef(k + m) for m in range(k)]      # intercepts (C, 1)

    # ---- main: dynamic ReLU over the spatial tile ----
    xv = x_ref[0].astype(jnp.float32)             # (C, T)
    acc = xv * a_cols[0] + b_cols[0]
    for j in range(1, k):                         # k is small & static
        acc = jnp.maximum(acc, xv * a_cols[j] + b_cols[j])
    o_ref[0] = acc.astype(o_ref.dtype)


# ------------------------------ tiling helper --------------------------------

def _pick_spatial_tile(hw, c, itemsize, vmem_budget=4 << 20):
    """Largest multiple-of-128 tile dividing `hw` whose double-buffered
    in+out blocks (4 * C * T * itemsize bytes) stay under `vmem_budget`.
    Falls back to the full extent when hw is not a multiple of 128 (the
    BlockSpec then uses full-extent blocks to satisfy the (8,128) rule)."""
    if hw % 128 != 0:
        return hw
    max_t = max(128, vmem_budget // (4 * c * itemsize))
    best, t = 128, 128
    while t <= min(hw, max_t):
        if hw % t == 0:
            best = t
        t += 128
    return best


# ------------------------------ python wrapper -------------------------------

def lang_dyrelu_b(x, q, params, *, k=2):
    """Forward pass of LangDyReLUB (conv_type='2d').

    x: (B, C, H, W)  any float dtype (bf16 halves HBM traffic)
    q: (B, q_dim)    float32
    """
    W1, b1, W2, b2, lambdas, init_v = params
    B, C, H, W = x.shape
    Dq = q.shape[1]
    Cr = W1.shape[1]
    twoK = 2 * k
    assert W2.shape == (Cr, twoK * C)

    # One-time parameter re-layout (tiny, plain JAX; XLA fuses it).
    # W2 column c*2k + m feeds coefficient slot m of channel c -> slot-major,
    # channel-on-sublane blocks the kernel can use without any relayout.
    w2t = jnp.transpose(W2.reshape(Cr, C, twoK), (2, 1, 0)).astype(jnp.float32)
    b2c = jnp.transpose(b2.reshape(C, twoK), (1, 0)).reshape(twoK, C, 1)
    b2c = b2c.astype(jnp.float32)
    w1 = W1.astype(jnp.float32)                         # (Dq, Cr)
    b1r = b1.reshape(1, Cr).astype(jnp.float32)
    q3 = q.reshape(B, Dq, 1).astype(jnp.float32)        # per-batch column
    lam = lambdas.astype(jnp.float32)                   # (2k,)
    ini = init_v.astype(jnp.float32)                    # (2k,)

    HW = H * W
    x_flat = x.reshape(B, C, HW)
    T = _pick_spatial_tile(HW, C, x.dtype.itemsize)
    n_s = HW // T

    out_flat = pl.pallas_call(
        functools.partial(_fused_dyrelu_kernel, k=k),
        out_shape=jax.ShapeDtypeStruct((B, C, HW), x.dtype),
        grid=(B, n_s),
        in_specs=[
            pl.BlockSpec(memory_space=pltpu.MemorySpace.SMEM),     # lambdas
            pl.BlockSpec(memory_space=pltpu.MemorySpace.SMEM),     # init_v
            pl.BlockSpec((1, Dq, 1), lambda b, s: (b, 0, 0)),      # q column
            pl.BlockSpec((Dq, Cr), lambda b, s: (0, 0)),           # W1
            pl.BlockSpec((1, Cr), lambda b, s: (0, 0)),            # b1
            pl.BlockSpec((twoK, C, Cr), lambda b, s: (0, 0, 0)),   # W2 re-laid
            pl.BlockSpec((twoK, C, 1), lambda b, s: (0, 0, 0)),    # b2 re-laid
            pl.BlockSpec((1, C, T), lambda b, s: (b, 0, s)),       # x tile
        ],
        out_specs=pl.BlockSpec((1, C, T), lambda b, s: (b, 0, s)),
        compiler_params=pltpu.CompilerParams(
            dimension_semantics=("parallel", "parallel")),
    )(lam, ini, q3, w1, b1r, w2t, b2c, x_flat)

    return out_flat.reshape(B, C, H, W)


# --------------------------- reference (pure JAX) -----------------------------

def lang_dyrelu_b_ref(x, q, params, *, k=2):
    W1, b1, W2, b2, lambdas, init_v = params
    B, C = x.shape[0], x.shape[1]
    theta = jnp.maximum(q @ W1 + b1, 0.0) @ W2 + b2
    theta = 2.0 * jax.nn.sigmoid(theta) - 1.0
    relu_coefs = theta.reshape(B, C, 2 * k) * lambdas + init_v
    x_perm = jnp.transpose(x, (2, 3, 0, 1))[..., None]          # (H, W, B, C, 1)
    output = x_perm * relu_coefs[:, :, :k] + relu_coefs[:, :, k:]
    result = jnp.max(output, axis=-1)                           # (H, W, B, C)
    return jnp.transpose(result, (2, 3, 0, 1))                  # (B, C, H, W)


# ------------------------------------ main ------------------------------------

if __name__ == "__main__":
    # Module hyper-parameters (synthetic, small).
    q_dim = 32
    channels = 16
    reduction = 4
    k = 2
    B, H, W = 2, 16, 16
    Cr = channels // reduction
    twoKC = 2 * k * channels

    key = jax.random.PRNGKey(0)
    k_x, k_q, k_w1, k_b1, k_w2, k_b2 = jax.random.split(key, 6)

    # Deterministic parameter init (nn.Linear weights stored as (in, out)).
    W1 = jax.random.normal(k_w1, (q_dim, Cr), jnp.float32) * 0.1
    b1 = jax.random.normal(k_b1, (Cr,), jnp.float32) * 0.1
    W2 = jax.random.normal(k_w2, (Cr, twoKC), jnp.float32) * 0.1
    b2 = jax.random.normal(k_b2, (twoKC,), jnp.float32) * 0.1
    lambdas = jnp.array([1.0] * k + [0.5] * k, jnp.float32)
    init_v = jnp.array([1.0] + [0.0] * (2 * k - 1), jnp.float32)
    params = (W1, b1, W2, b2, lambdas, init_v)

    x = jax.random.normal(k_x, (B, channels, H, W), jnp.float32)
    q = jax.random.normal(k_q, (B, q_dim), jnp.float32)

    # f32 path (matches the PyTorch module's default numerics).
    out = jax.block_until_ready(lang_dyrelu_b(x, q, params, k=k))
    ref = lang_dyrelu_b_ref(x, q, params, k=k)
    assert out.shape == (B, channels, H, W)
    assert jnp.allclose(out, ref, atol=2e-4, rtol=1e-4), float(
        jnp.max(jnp.abs(out - ref)))

    # bf16 I/O path: halves HBM traffic of the memory-bound main loop
    # (coefficient / max math stays in f32 inside the kernel).
    x_bf = x.astype(jnp.bfloat16)
    out_bf = jax.block_until_ready(lang_dyrelu_b(x_bf, q, params, k=k))
    ref_bf = lang_dyrelu_b_ref(x_bf.astype(jnp.float32), q, params, k=k)
    assert out_bf.dtype == jnp.bfloat16
    assert jnp.allclose(out_bf.astype(jnp.float32), ref_bf, atol=5e-2, rtol=5e-2)

    print("KERNEL_OK")
</pallas_src>

<mosaic_0001>
module attributes {stable_mosaic.version = 11 : i64} {
  func.func @_fused_dyrelu_kernel(%arg0: i32, %arg1: i32, %arg2: memref<4xf32, #tpu.memory_space<smem>>, %arg3: memref<4xf32, #tpu.memory_space<smem>>, %arg4: memref<1x32x1xf32, #tpu.memory_space<vmem>>, %arg5: memref<32x4xf32, #tpu.memory_space<vmem>>, %arg6: memref<1x4xf32, #tpu.memory_space<vmem>>, %arg7: memref<4x16x4xf32, #tpu.memory_space<vmem>>, %arg8: memref<4x16x1xf32, #tpu.memory_space<vmem>>, %arg9: memref<1x16x256xf32, #tpu.memory_space<vmem>>, %arg10: memref<1x16x256xf32, #tpu.memory_space<vmem>>) attributes {dimension_semantics = [#tpu.dimension_semantics<parallel>, #tpu.dimension_semantics<parallel>], iteration_bounds = array<i64: 2, 1>, scalar_prefetch = 0 : i64, scratch_operands = 0 : i64, tpu.core_type = #tpu.core_type<tc>, window_params = [{transform_indices = @transform_0, window_bounds = array<i64: 4>}, {transform_indices = @transform_1, window_bounds = array<i64: 4>}, {transform_indices = @transform_2, window_bounds = array<i64: 1, 32, 1>}, {pipeline_mode = #tpu.pipeline_mode<synchronous>, transform_indices = @transform_3, window_bounds = array<i64: 32, 4>}, {pipeline_mode = #tpu.pipeline_mode<synchronous>, transform_indices = @transform_4, window_bounds = array<i64: 1, 4>}, {pipeline_mode = #tpu.pipeline_mode<synchronous>, transform_indices = @transform_5, window_bounds = array<i64: 4, 16, 4>}, {pipeline_mode = #tpu.pipeline_mode<synchronous>, transform_indices = @transform_6, window_bounds = array<i64: 4, 16, 1>}, {transform_indices = @transform_7, window_bounds = array<i64: 1, 16, 256>}, {transform_indices = @transform_8, window_bounds = array<i64: 1, 16, 256>}]} {
    %c0 = arith.constant 0 : index
    %c0_0 = arith.constant 0 : index
    %c0_1 = arith.constant 0 : index
    %0 = vector.load %arg4[%c0, %c0_0, %c0_1] : memref<1x32x1xf32, #tpu.memory_space<vmem>>, vector<1x32x1xf32>
    %1 = vector.shape_cast %0 : vector<1x32x1xf32> to vector<32x1xf32>
    %c0_2 = arith.constant 0 : index
    %c0_3 = arith.constant 0 : index
    %2 = vector.load %arg5[%c0_2, %c0_3] : memref<32x4xf32, #tpu.memory_space<vmem>>, vector<32x4xf32>
    %3 = vector.broadcast %1 : vector<32x1xf32> to vector<32x4xf32>
    %4 = arith.mulf %2, %3 : vector<32x4xf32>
    %cst = arith.constant dense<0.000000e+00> : vector<4xf32>
    %5 = vector.multi_reduction <add>, %4, %cst [0] : vector<32x4xf32> to vector<4xf32>
    %6 = vector.shape_cast %5 : vector<4xf32> to vector<1x4xf32>
    %c0_4 = arith.constant 0 : index
    %c0_5 = arith.constant 0 : index
    %7 = vector.load %arg6[%c0_4, %c0_5] : memref<1x4xf32, #tpu.memory_space<vmem>>, vector<1x4xf32>
    %8 = arith.addf %6, %7 : vector<1x4xf32>
    %cst_6 = arith.constant 0.000000e+00 : f32
    %9 = vector.broadcast %cst_6 : f32 to vector<1x4xf32>
    %10 = arith.maximumf %8, %9 : vector<1x4xf32>
    %c0_7 = arith.constant 0 : index
    %c0_8 = arith.constant 0 : index
    %c0_9 = arith.constant 0 : index
    %11 = vector.load %arg7[%c0_7, %c0_8, %c0_9] : memref<4x16x4xf32, #tpu.memory_space<vmem>>, vector<1x16x4xf32>
    %12 = vector.shape_cast %11 : vector<1x16x4xf32> to vector<16x4xf32>
    %13 = vector.broadcast %10 : vector<1x4xf32> to vector<16x4xf32>
    %14 = arith.mulf %12, %13 : vector<16x4xf32>
    %cst_10 = arith.constant dense<0.000000e+00> : vector<16xf32>
    %15 = vector.multi_reduction <add>, %14, %cst_10 [1] : vector<16x4xf32> to vector<16xf32>
    %16 = vector.shape_cast %15 : vector<16xf32> to vector<16x1xf32>
    %c0_11 = arith.constant 0 : index
    %c0_12 = arith.constant 0 : index
    %c0_13 = arith.constant 0 : index
    %17 = vector.load %arg8[%c0_11, %c0_12, %c0_13] : memref<4x16x1xf32, #tpu.memory_space<vmem>>, vector<1x16x1xf32>
    %18 = vector.shape_cast %17 : vector<1x16x1xf32> to vector<16x1xf32>
    %19 = arith.addf %16, %18 : vector<16x1xf32>
    %cst_14 = arith.constant 5.000000e-01 : f32
    %20 = vector.broadcast %cst_14 : f32 to vector<16x1xf32>
    %21 = arith.mulf %20, %19 : vector<16x1xf32>
    %22 = math.tanh %21 : vector<16x1xf32>
    %c0_15 = arith.constant 0 : index
    %23 = memref.load %arg2[%c0_15] : memref<4xf32, #tpu.memory_space<smem>>
    %24 = vector.broadcast %23 : f32 to vector<16x1xf32>
    %25 = arith.mulf %22, %24 : vector<16x1xf32>
    %c0_16 = arith.constant 0 : index
    %26 = memref.load %arg3[%c0_16] : memref<4xf32, #tpu.memory_space<smem>>
    %27 = vector.broadcast %26 : f32 to vector<16x1xf32>
    %28 = arith.addf %25, %27 : vector<16x1xf32>
    %c1 = arith.constant 1 : index
    %c0_17 = arith.constant 0 : index
    %c0_18 = arith.constant 0 : index
    %29 = vector.load %arg7[%c1, %c0_17, %c0_18] : memref<4x16x4xf32, #tpu.memory_space<vmem>>, vector<1x16x4xf32>
    %30 = vector.shape_cast %29 : vector<1x16x4xf32> to vector<16x4xf32>
    %31 = vector.broadcast %10 : vector<1x4xf32> to vector<16x4xf32>
    %32 = arith.mulf %30, %31 : vector<16x4xf32>
    %cst_19 = arith.constant dense<0.000000e+00> : vector<16xf32>
    %33 = vector.multi_reduction <add>, %32, %cst_19 [1] : vector<16x4xf32> to vector<16xf32>
    %34 = vector.shape_cast %33 : vector<16xf32> to vector<16x1xf32>
    %c1_20 = arith.constant 1 : index
    %c0_21 = arith.constant 0 : index
    %c0_22 = arith.constant 0 : index
    %35 = vector.load %arg8[%c1_20, %c0_21, %c0_22] : memref<4x16x1xf32, #tpu.memory_space<vmem>>, vector<1x16x1xf32>
    %36 = vector.shape_cast %35 : vector<1x16x1xf32> to vector<16x1xf32>
    %37 = arith.addf %34, %36 : vector<16x1xf32>
    %cst_23 = arith.constant 5.000000e-01 : f32
    %38 = vector.broadcast %cst_23 : f32 to vector<16x1xf32>
    %39 = arith.mulf %38, %37 : vector<16x1xf32>
    %40 = math.tanh %39 : vector<16x1xf32>
    %c1_24 = arith.constant 1 : index
    %41 = memref.load %arg2[%c1_24] : memref<4xf32, #tpu.memory_space<smem>>
    %42 = vector.broadcast %41 : f32 to vector<16x1xf32>
    %43 = arith.mulf %40, %42 : vector<16x1xf32>
    %c1_25 = arith.constant 1 : index
    %44 = memref.load %arg3[%c1_25] : memref<4xf32, #tpu.memory_space<smem>>
    %45 = vector.broadcast %44 : f32 to vector<16x1xf32>
    %46 = arith.addf %43, %45 : vector<16x1xf32>
    %c2 = arith.constant 2 : index
    %c0_26 = arith.constant 0 : index
    %c0_27 = arith.constant 0 : index
    %47 = vector.load %arg7[%c2, %c0_26, %c0_27] : memref<4x16x4xf32, #tpu.memory_space<vmem>>, vector<1x16x4xf32>
    %48 = vector.shape_cast %47 : vector<1x16x4xf32> to vector<16x4xf32>
    %49 = vector.broadcast %10 : vector<1x4xf32> to vector<16x4xf32>
    %50 = arith.mulf %48, %49 : vector<16x4xf32>
    %cst_28 = arith.constant dense<0.000000e+00> : vector<16xf32>
    %51 = vector.multi_reduction <add>, %50, %cst_28 [1] : vector<16x4xf32> to vector<16xf32>
    %52 = vector.shape_cast %51 : vector<16xf32> to vector<16x1xf32>
    %c2_29 = arith.constant 2 : index
    %c0_30 = arith.constant 0 : index
    %c0_31 = arith.constant 0 : index
    %53 = vector.load %arg8[%c2_29, %c0_30, %c0_31] : memref<4x16x1xf32, #tpu.memory_space<vmem>>, vector<1x16x1xf32>
    %54 = vector.shape_cast %53 : vector<1x16x1xf32> to vector<16x1xf32>
    %55 = arith.addf %52, %54 : vector<16x1xf32>
    %cst_32 = arith.constant 5.000000e-01 : f32
    %56 = vector.broadcast %cst_32 : f32 to vector<16x1xf32>
    %57 = arith.mulf %56, %55 : vector<16x1xf32>
    %58 = math.tanh %57 : vector<16x1xf32>
    %c2_33 = arith.constant 2 : index
    %59 = memref.load %arg2[%c2_33] : memref<4xf32, #tpu.memory_space<smem>>
    %60 = vector.broadcast %59 : f32 to vector<16x1xf32>
    %61 = arith.mulf %58, %60 : vector<16x1xf32>
    %c2_34 = arith.constant 2 : index
    %62 = memref.load %arg3[%c2_34] : memref<4xf32, #tpu.memory_space<smem>>
    %63 = vector.broadcast %62 : f32 to vector<16x1xf32>
    %64 = arith.addf %61, %63 : vector<16x1xf32>
    %c3 = arith.constant 3 : index
    %c0_35 = arith.constant 0 : index
    %c0_36 = arith.constant 0 : index
    %65 = vector.load %arg7[%c3, %c0_35, %c0_36] : memref<4x16x4xf32, #tpu.memory_space<vmem>>, vector<1x16x4xf32>
    %66 = vector.shape_cast %65 : vector<1x16x4xf32> to vector<16x4xf32>
    %67 = vector.broadcast %10 : vector<1x4xf32> to vector<16x4xf32>
    %68 = arith.mulf %66, %67 : vector<16x4xf32>
    %cst_37 = arith.constant dense<0.000000e+00> : vector<16xf32>
    %69 = vector.multi_reduction <add>, %68, %cst_37 [1] : vector<16x4xf32> to vector<16xf32>
    %70 = vector.shape_cast %69 : vector<16xf32> to vector<16x1xf32>
    %c3_38 = arith.constant 3 : index
    %c0_39 = arith.constant 0 : index
    %c0_40 = arith.constant 0 : index
    %71 = vector.load %arg8[%c3_38, %c0_39, %c0_40] : memref<4x16x1xf32, #tpu.memory_space<vmem>>, vector<1x16x1xf32>
    %72 = vector.shape_cast %71 : vector<1x16x1xf32> to vector<16x1xf32>
    %73 = arith.addf %70, %72 : vector<16x1xf32>
    %cst_41 = arith.constant 5.000000e-01 : f32
    %74 = vector.broadcast %cst_41 : f32 to vector<16x1xf32>
    %75 = arith.mulf %74, %73 : vector<16x1xf32>
    %76 = math.tanh %75 : vector<16x1xf32>
    %c3_42 = arith.constant 3 : index
    %77 = memref.load %arg2[%c3_42] : memref<4xf32, #tpu.memory_space<smem>>
    %78 = vector.broadcast %77 : f32 to vector<16x1xf32>
    %79 = arith.mulf %76, %78 : vector<16x1xf32>
    %c3_43 = arith.constant 3 : index
    %80 = memref.load %arg3[%c3_43] : memref<4xf32, #tpu.memory_space<smem>>
    %81 = vector.broadcast %80 : f32 to vector<16x1xf32>
    %82 = arith.addf %79, %81 : vector<16x1xf32>
    %c0_44 = arith.constant 0 : index
    %c0_45 = arith.constant 0 : index
    %c0_46 = arith.constant 0 : index
    %83 = vector.load %arg9[%c0_44, %c0_45, %c0_46] : memref<1x16x256xf32, #tpu.memory_space<vmem>>, vector<1x16x256xf32>
    %84 = vector.shape_cast %83 : vector<1x16x256xf32> to vector<16x256xf32>
    %85 = vector.broadcast %28 : vector<16x1xf32> to vector<16x256xf32>
    %86 = arith.mulf %84, %85 : vector<16x256xf32>
    %87 = vector.broadcast %64 : vector<16x1xf32> to vector<16x256xf32>
    %88 = arith.addf %86, %87 : vector<16x256xf32>
    %89 = vector.broadcast %46 : vector<16x1xf32> to vector<16x256xf32>
    %90 = arith.mulf %84, %89 : vector<16x256xf32>
    %91 = vector.broadcast %82 : vector<16x1xf32> to vector<16x256xf32>
    %92 = arith.addf %90, %91 : vector<16x256xf32>
    %93 = arith.maximumf %88, %92 : vector<16x256xf32>
    %c0_47 = arith.constant 0 : index
    %c0_48 = arith.constant 0 : index
    %c0_49 = arith.constant 0 : index
    %94 = vector.load %arg10[%c0_47, %c0_48, %c0_49] : memref<1x16x256xf32, #tpu.memory_space<vmem>>, vector<1x16x256xf32>
    %95 = vector.shape_cast %94 : vector<1x16x256xf32> to vector<16x256xf32>
    %96 = vector.shape_cast %93 : vector<16x256xf32> to vector<1x16x256xf32>
    tpu.vector_store %arg10[%c0_47, %c0_48, %c0_49], %96 {strides = array<i32>} : memref<1x16x256xf32, #tpu.memory_space<vmem>>, vector<1x16x256xf32>,
    return
  }
  func.func @transform_0(%arg0: i32, %arg1: i32) -> i32 {
    %c0_i32 = arith.constant 0 : i32
    %c0_i32_0 = arith.constant 0 : i32
    return %c0_i32 : i32
  }
  func.func @transform_1(%arg0: i32, %arg1: i32) -> i32 {
    %c0_i32 = arith.constant 0 : i32
    %c0_i32_0 = arith.constant 0 : i32
    return %c0_i32 : i32
  }
  func.func @transform_2(%arg0: i32, %arg1: i32) -> (i32, i32, i32) {
    %c0_i32 = arith.constant 0 : i32
    %c0_i32_0 = arith.constant 0 : i32
    %c0_i32_1 = arith.constant 0 : i32
    return %arg0, %c0_i32, %c0_i32_0 : i32, i32, i32
  }
  func.func @transform_3(%arg0: i32, %arg1: i32) -> (i32, i32) {
    %c0_i32 = arith.constant 0 : i32
    %c0_i32_0 = arith.constant 0 : i32
    %c0_i32_1 = arith.constant 0 : i32
    return %c0_i32, %c0_i32_0 : i32, i32
  }
  func.func @transform_4(%arg0: i32, %arg1: i32) -> (i32, i32) {
    %c0_i32 = arith.constant 0 : i32
    %c0_i32_0 = arith.constant 0 : i32
    %c0_i32_1 = arith.constant 0 : i32
    return %c0_i32, %c0_i32_0 : i32, i32
  }
  func.func @transform_5(%arg0: i32, %arg1: i32) -> (i32, i32, i32) {
    %c0_i32 = arith.constant 0 : i32
    %c0_i32_0 = arith.constant 0 : i32
    %c0_i32_1 = arith.constant 0 : i32
    %c0_i32_2 = arith.constant 0 : i32
    return %c0_i32, %c0_i32_0, %c0_i32_1 : i32, i32, i32
  }
  func.func @transform_6(%arg0: i32, %arg1: i32) -> (i32, i32, i32) {
    %c0_i32 = arith.constant 0 : i32
    %c0_i32_0 = arith.constant 0 : i32
    %c0_i32_1 = arith.constant 0 : i32
    %c0_i32_2 = arith.constant 0 : i32
    return %c0_i32, %c0_i32_0, %c0_i32_1 : i32, i32, i32
  }
  func.func @transform_7(%arg0: i32, %arg1: i32) -> (i32, i32, i32) {
    %c0_i32 = arith.constant 0 : i32
    %c0_i32_0 = arith.constant 0 : i32
    return %arg0, %c0_i32, %arg1 : i32, i32, i32
  }
  func.func @transform_8(%arg0: i32, %arg1: i32) -> (i32, i32, i32) {
    %c0_i32 = arith.constant 0 : i32
    %c0_i32_0 = arith.constant 0 : i32
    return %arg0, %c0_i32, %arg1 : i32, i32, i32
  }
}

</mosaic_0001>

<bundles_post_ra>
// kernel: tpu_custom_call.1
= control target key start
LH: loop header
LB: loop body
LE: loop exit
PB: predicated region body
PF: predicated region fallthrough
CT: control target
= control target key end

     0   :  { %13 = vsyncpa [#allocation4], 0  ;;  %s1314_s0 = inlined_call_operand.vmem [shape: f32[4], index: 0, kind: input, shape index: {}]   ;;  %s1315_s1 = inlined_call_operand.vmem [shape: f32[4], index: 1, kind: input, shape index: {}]   ;;  %s1316_s2 = inlined_call_operand.vmem [shape: f32[2,32,1], index: 2, kind: input, shape index: {}]   ;;  %s1317_s3 = inlined_call_operand.vmem [shape: f32[32,4], index: 3, kind: input, shape index: {}]   ;;  %s1318_s4 = inlined_call_operand.vmem [shape: f32[1,4], index: 4, kind: input, shape index: {}]   ;;  %s1319_s5 = inlined_call_operand.vmem [shape: f32[4,16,4], index: 5, kind: input, shape index: {}]   ;;  %s1320_s6 = inlined_call_operand.vmem [shape: f32[4,16,1], index: 6, kind: input, shape index: {}]   ;;  %s1321_s7 = inlined_call_operand.vmem [shape: f32[2,16,256], index: 7, kind: input, shape index: {}]   ;;  %s1322_s8 = inlined_call_operand.hbm [shape: f32[2,16,256], index: 8, kind: output, shape index: {}]  }
   0x1   :  { %14 = vsyncpa [#allocation6], 0 }
   0x2   :  { %15 = vsyncpa [#allocation3], 0 }
   0x3   :  { %17 = vsyncpa [#allocation3 + $0x1], 0  ;;  %s1048_s27 = smov 0   ;;  %s1050_s28 = smov 0  }
   0x4   :  { %s1052_s29 = smov 0   ;;  %s1054_s30 = smov 0  }
   0x5   :  { %s1056_s9 = smov 0   ;;  %s1058_s10 = smov 0  }
   0x6 LB: > { %s742_s11 = sadd.s32 4294967295, %s995_s10   ;;  %s743_s12 = sadd.s32 4294967294, %s995_s10   ;;  %s995_s10 = sphi %s1058_s10, %s23_s10   ;;  %s991_s9 = sphi %s1056_s9, %s1340_s9   ;;  %s987_s30 = sphi %s1054_s30, %s1339_s30   ;;  %s983_s29 = sphi %s1052_s29, %s1338_s29   ;;  %s979_s28 = sphi %s1050_s28, %s1337_s28   ;;  %s975_s27 = sphi %s1048_s27, %s1336_s27  }
   0x7   : > { %s35_s13 = sadd.s32 1, %s991_s9  ;;  %s224_s14 = sadd.s32 1, %s983_s29 }
   0x8   : > { %p37_p0 = scmp.ge.s32.totalorder %s35_s13, 2  ;;  %p234_p1 = scmp.ne.s32.totalorder %s983_s29, %s979_s28 }
   0x9   : > { %p235_p2 = scmp.eq.s32.totalorder %s742_s11, 1  ;;  %p240_p3 = scmp.ne.s32.totalorder %s979_s28, %s975_s27 }
   0xa   : > { %s1342_s13 = smov (%p37_p0, %s35_s13), 0  ;;  %p241_p5 = scmp.eq.s32.totalorder %s743_s12, 1 }
   0xb   : > { %p1088_p4 = por %p235_p2, %p234_p1  ;;  %s219_s16 = ssub.s32 %s991_s9, %s1342_s13 }
   0xc   : > { %p744_p6 = scmp.ge.s32.totalorder %s995_s10, 1  ;;  %p222_p7 = scmp.eq.s32.totalorder %s219_s16, 0 }
   0xd   : > { %s1327_s15 = scalar_select %p1088_p4, 1, 0 }
   0xe   : > { %p1095_p8 = por %p241_p5, %p240_p3  ;;  %p248_p9 = scmp.lt.s32.totalorder %s995_s10, 3 }
   0xf   : > { %s1101_s18 = scalar_select %p222_p7, %s983_s29, %s224_s14  }
  0x10   : > { %s1328_s17 = scalar_select %p1095_p8, 1, 0 }
  0x11   : > { %p1103_p10 = pnand %p744_p6, %p248_p9  ;;  %p1107_p11 = scmp.eq.s32.totalorder %s742_s11, 0 }
  0x12   : > { %s261_s23 = sshll.u32 %s1314_s0, 4  ;;  %s272_s26 = sshll.u32 %s1315_s1, 4  ;;  %s262_s23 = int_to_ptr.vmem [resolvable:$true] %s261_s23  ;;  %s273_s26 = int_to_ptr.vmem [resolvable:$true] %s272_s26 }
  0x13   : > { %s1329_s19 = scalar_select %p1103_p10, 1, 0 }
  0x14   : > { %s1330_s20 = scalar_select %p1107_p11, 1, 0 }
  0x15   : > { %p792_p12 = pneg %p1103_p10  ;;  %s879_s11 = scalar_lea.vmem %s262_s23, 16 }
  0x16   : > { %p880_p0 = scmp.ne.s32.totalorder %s262_s23, %s879_s11  ;;  %p887_p5 = scmp.lt.s32.totalorder %s262_s23, %s262_s23 }
  0x17   : > { %p1121_p13 = pnand %p1107_p11, %p792_p12  ;;  %p888_p6 = scmp.lt.s32.totalorder %s879_s11, %s879_s11 }
  0x19   : > { %p881_p1 = pneg %p1121_p13  ;;  %p889_p7 = por %p888_p6, %p887_p5 }
  0x1b   : > { %p882_p2 = pnand %p881_p1, %p880_p0 }
  0x1d   : > { %p883_p3 = pneg %p882_p2 }
  0x1f   : > { %p890_p9 = pnand %p889_p7, %p883_p3 }
  0x21   : > { %893 = shalt.err (!%p890_p9)
}
  0x22   : > { %s997_s14 = smov [#allocation2]   ;;  %s894_s16 = scalar_lea.vmem %s273_s26, 16 }
  0x23   : > { %795 = dma.vmem_to_smem (!%p1121_p13), %s262_s23, 16, %s997_s14, [#allocation4]  }
  0x24   : > { %p895_p12 = scmp.ne.s32.totalorder %s273_s26, %s894_s16  ;;  %p902_p11 = scmp.lt.s32.totalorder %s273_s26, %s273_s26 }
  0x25   : > { %p903_p10 = scmp.lt.s32.totalorder %s894_s16, %s894_s16 }
  0x26   : > { %p897_p8 = pnand %p895_p12, %p881_p1 }
  0x27   : > { %p904_p0 = por %p903_p10, %p902_p11 }
  0x28   : > { %p898_p4 = pneg %p897_p8 }
  0x2a   : > { %p905_p2 = pnand %p904_p0, %p898_p4 }
  0x2c   : > { %908 = shalt.err (!%p905_p2)
}
  0x2d   : > { %s998_s21 = smov [#allocation5]   ;;  %p1332_p3 = scmp.ne.s32.totalorder %s1329_s19, 0 }
  0x2e   : > { %798 = dma.vmem_to_smem (!%p1121_p13), %s273_s26, 16, %s998_s21, [#allocation6]  }
  0x2f   : > { %318 = sbr.rel (%p1332_p3) target bundleno = 553 (0x229), region = 52  ;;  %p1333_p5 = scmp.ne.s32.totalorder (!%p1332_p3), %s1330_s20, 0 }
  0x36   : > { %962 = dma.done.wait (%p1333_p5), [#allocation4], 16  }
  0x37   : > { %964 = vsyncadd (%p1333_p5), [#allocation4], 4294967280 }
  0x38   : > { %966 = dma.done.wait (%p1333_p5), [#allocation6], 16  }
  0x39   : > { %968 = vsyncadd (%p1333_p5), [#allocation6], 4294967280 }
  0x3a   : > { %328 = sfence }
  0x3b   : > { %p366_p4 = scmp.lt.s32.totalorder %s987_s30, 1  ;;  %v999_v0 = vmov 0   ;;  %v386_v6 = vld [vmem:[%s1317_s3] sm:$0xff]  ;;  %v388_v8 = vld [vmem:[%s1317_s3 + $0x10] sm:$0xff]  ;;  %v387_v9 = vld [vmem:[%s1317_s3 + $0x8] sm:$0xff]  ;;  %vm414_vm0 = vcmask 31744   ;;  %v433_v26 = vlaneseq }
  0x3c   : > { %862 = vset.pattern.permute.xlu1 %v999_v0  ;;  %861 = vset.pattern.permute.xlu0 %v999_v0  ;;  %v389_v11 = vld [vmem:[%s1317_s3 + $0x18] sm:$0xff]  ;;  %v428_v31 = vld [vmem:[%s1318_s4] sm:$0x1]  ;;  %v432_v36 = vld [vmem:[%s1319_s5 + $0x8] sm:$0xff]  ;;  %s1214_s14 = sld [smem:[#allocation2]]  ;;  %s1224_s20 = sld [smem:[#allocation2 + $0x2]] }
  0x3d   : > { %s1143_s19 = scalar_select %p366_p4, %s987_s30, 1  ;;  %v434_v29 = vshrl.u32 %v433_v26, 7  ;;  %v431_v37 = vld [vmem:[%s1319_s5] sm:$0xff]  ;;  %v756_v40 = vld [vmem:[%s1319_s5 + $0x10] sm:$0xff]  ;;  %v757_v48 = vld [vmem:[%s1319_s5 + $0x18] sm:$0xff] }
  0x3e   : > { %v762_v39 = vld [vmem:[%s1319_s5 + $0x20] sm:$0xff]  ;;  %v768_v47 = vld [vmem:[%s1319_s5 + $0x30] sm:$0xff]  ;;  %v763_v53 = vld [vmem:[%s1319_s5 + $0x28] sm:$0xff]  ;;  %s1229_s11 = sld [smem:[#allocation2 + $0x1]]  ;;  %s1231_s16 = sld [smem:[#allocation5 + $0x2]] }
  0x3f   : > { %s779_s22 = sshll.u32 %s1143_s19, 5  ;;  %v435_v33 = vsub.s32 0, %v434_v29  ;;  %v769_v57 = vld [vmem:[%s1319_s5 + $0x38] sm:$0xff]  ;;  %v446_v61 = vld [vmem:[%s1320_s6 + $0x8] sm:$0xff]  ;;  %v445_v62 = vld [vmem:[%s1320_s6] sm:$0xff]  ;;  %s1233_s21 = sld [smem:[#allocation5 + $0x1]] }
  0x40   : > { %s370_s25 = scalar_lea.vmem %s1316_s2, %s779_s22  ;;  %s1236_s23 = sld [smem:[#allocation2 + $0x3]] }
  0x41   : > { %v384_v1 = vld [vmem:[%s370_s25 + $0x10] sm:$0xff]  ;;  %v382_v2 = vld [vmem:[%s370_s25] sm:$0xff]  ;;  %v385_v3 = vld [vmem:[%s370_s25 + $0x18] sm:$0xff]  ;;  %s1242_s12 = sld [smem:[#allocation5 + $0x3]]  ;;  %p1334_p10 = scmp.ne.s32.totalorder %s1327_s15, 0 }
  0x42   : > { %402 = vperm.xlu1 %862, %v384_v1   ;;  %392 = vperm.xlu0 %861, %v382_v2   ;;  %v383_v4 = vld [vmem:[%s370_s25 + $0x8] sm:$0xff]  ;;  %s1222_s25 = sld [smem:[#allocation5]] }
  0x46   : > { %407 = vperm.xlu1 %862, %v385_v3   ;;  %397 = vperm.xlu0 %861, %v383_v4   ;;  %v764_v3 = vld [vmem:[%s1320_s6 + $0x20] sm:$0xff]  ;;  %v758_v4 = vld [vmem:[%s1320_s6 + $0x10] sm:$0xff] }
  0xc1   : > { %v403_v5 = vpop.permute.xlu1 %402  ;;  %v393_v7 = vpop.permute.xlu0 %392 }
  0xc2   : > { %v410_v10 = vmul.f32 %v393_v7, %v386_v6  ;;  %v412_v14 = vmul.f32 %v403_v5, %v388_v8 }
  0xc4   : > { %v415_v16 = vsel %vm414_vm0, %v410_v10, 0.0  ;;  %v418_v20 = vsel %vm414_vm0, %v412_v14, 0.0 }
  0xc5   : > { %v408_v12 = vpop.permute.xlu1 %407  ;;  %v398_v13 = vpop.permute.xlu0 %397 }
  0xc6   : > { %v411_v15 = vmul.f32 %v398_v13, %v387_v9  ;;  %v413_v17 = vmul.f32 %v408_v12, %v389_v11  ;;  %v770_v11 = vld [vmem:[%s1320_s6 + $0x30] sm:$0xff]  ;;  %v759_v12 = vld [vmem:[%s1320_s6 + $0x18] sm:$0xff] }
  0xc8   : > { %v416_v18 = vsel %vm414_vm0, %v411_v15, 0.0  ;;  %v420_v22 = vsel %vm414_vm0, %v413_v17, 0.0 }
  0xc9   : > { %v417_v19 = vadd.f32 %v416_v18, %v415_v16 }
  0xcb   : > { %v419_v21 = vadd.f32 %v418_v20, %v417_v19  ;;  %v765_v19 = vld [vmem:[%s1320_s6 + $0x28] sm:$0xff] }
  0xcd   : > { %v421_v23 = vadd.f32 %v420_v22, %v419_v21 }
  0xcf   : > { %v422_v24 = vrot.slane %v421_v23, 4 }
  0xd1   : > { %v423_v25 = vadd.f32 %v422_v24, %v421_v23  ;;  %v454_v24 = vstv %s1214_s14  ;;  %s1000_s14 = smov [#allocation7]  }
  0xd3   : > { %v424_v27 = vrot.slane %v423_v25, 2 }
  0xd5   : > { %v425_v28 = vadd.f32 %v424_v27, %v423_v25  ;;  %v771_v25 = vld [vmem:[%s1320_s6 + $0x38] sm:$0xff] }
  0xd7   : > { %v426_v30 = vrot.slane %v425_v28, 1 }
  0xd9   : > { %v427_v32 = vadd.f32 %v426_v30, %v425_v28  ;;  %v458_v28 = vstv %s1222_s25  ;;  %s913_s25 = sshll.u32 %s1000_s14, 4  ;;  %s914_s25 = int_to_ptr.vmem [resolvable:$false] %s913_s25 }
  0xdb   : > { %v429_v34 = vadd.f32 %v428_v31, %v427_v32 }
  0xdd   : > { %v430_v35 = vmax.f32 %v429_v34, 0.0  ;;  %v510_v34 = vstv %s1224_s20  ;;  %s379_s20 = scalar_lea.vmem %s1321_s7, %s779_s22 }
  0xdf   : > { %v436_v38 = vrot.slane %v430_v35, %v435_v33 }
  0xe1   : > { %v438_v41 = vmul.f32 %v436_v38, %v432_v36  ;;  %v437_v42 = vmul.f32 %v436_v38, %v431_v37  ;;  %v492_v45 = vmul.f32 %v762_v39, %v436_v38  ;;  %v464_v46 = vmul.f32 %v756_v40, %v436_v38 }
  0xe2   : > { %v520_v51 = vmul.f32 %v768_v47, %v436_v38  ;;  %v465_v52 = vmul.f32 %v757_v48, %v436_v38  ;;  %v493_v56 = vmul.f32 %v763_v53, %v436_v38  ;;  %v521_v59 = vmul.f32 %v769_v57, %v436_v38 }
  0xe3   : > { %v442_v43 = vsel %vm414_vm0, %v438_v41, 0.0  ;;  %v439_v44 = vsel %vm414_vm0, %v437_v42, 0.0  ;;  %v494_v49 = vsel %vm414_vm0, %v492_v45, 0.0  ;;  %v466_v50 = vsel %vm414_vm0, %v464_v46, 0.0 }
  0xe4   : > { %443 = vadd.xlane.f32.xlu1 %v442_v43  ;;  %440 = vadd.xlane.f32.xlu0 %v439_v44  ;;  %v522_v54 = vsel %vm414_vm0, %v520_v51, 0.0  ;;  %v469_v55 = vsel %vm414_vm0, %v465_v52, 0.0  ;;  %v497_v58 = vsel %vm414_vm0, %v493_v56, 0.0  ;;  %v525_v60 = vsel %vm414_vm0, %v521_v59, 0.0 }
  0xe5   : > { %v482_v36 = vstv %s1229_s11  ;;  %v514_v40 = vstv %s1231_s16  ;;  %v486_v43 = vstv %s1233_s21  ;;  %v538_v45 = vstv %s1236_s23  ;;  %s363_s11 = sand.u32 1, %s979_s28   ;;  %s781_s21 = sshll.u32 %s987_s30, 9 }
  0xe6   : > { %s751_s16 = sshll.u32 %s363_s11, 5  ;;  %s1264_s26 = scalar_lea.hbm %s1322_s8, %s781_s21 }
  0xe7   : > { %s365_s19 = scalar_lea.vmem [#allocation7], %s751_s16  ;;  %s1268_s30 = scalar_lea.sflag [#allocation3], %s363_s11 }
  0xe8   : > { %495 = vadd.xlane.f32.xlu1 %v494_v49  ;;  %467 = vadd.xlane.f32.xlu0 %v466_v50  ;;  %v542_v49 = vstv %s1242_s12  ;;  %s629_s22 = sshll.u32 %s365_s19, 4  ;;  %s1259_s22 = int_to_ptr.vmem [resolvable:$true] %s629_s22 }
  0xe9   : > { %s909_s12 = scalar_lea.vmem %s1259_s22, 512  ;;  %p916_p1 = scmp.lt.s32.totalorder %s1259_s22, %s914_s25 }
  0xea   : > { %p910_p8 = scmp.ne.s32.totalorder %s1259_s22, %s909_s12 }
  0xec   : > { %523 = vadd.xlane.f32.xlu1 %v522_v54  ;;  %470 = vadd.xlane.f32.xlu0 %v469_v55  ;;  %p911_p11 = pnand %p910_p8, %p1334_p10 }
  0xee   : > { %p912_p13 = pneg %p911_p11 }
  0xf0   : > { %498 = vadd.xlane.f32.xlu0 %v497_v58 }
  0xf4   : > { %526 = vadd.xlane.f32.xlu0 %v525_v60 }
 0x171   : > { %v444_v63 = vpop.xlane.xlu1 %443  ;;  %v441_v0 = vpop.xlane.xlu0 %440 }
 0x172   : > { %v448_v1 = vadd.f32 %v446_v61, %v444_v63  ;;  %v447_v2 = vadd.f32 %v445_v62, %v441_v0  ;;  %v545_v63 = vld [vmem:[%s379_s20] sm:$0xff]  ;;  %v546_v0 = vld [vmem:[%s379_s20 + $0x8] sm:$0xff] }
 0x174   : > { %v450_v5 = vmul.f32 0.5, %v448_v1  ;;  %v449_v6 = vmul.f32 0.5, %v447_v2 }
 0x175   : > { %v496_v7 = vpop.xlane.xlu1 %495  ;;  %v468_v8 = vpop.xlane.xlu0 %467 }
 0x176   : > { %863 = vtanh.f32 %v450_v5  ;;  %v503_v9 = vadd.f32 %v764_v3, %v496_v7  ;;  %v475_v10 = vadd.f32 %v758_v4, %v468_v8 }
 0x177   : > { %865 = vtanh.f32 %v449_v6 }
 0x178   : > { %v505_v13 = vmul.f32 0.5, %v503_v9  ;;  %v477_v14 = vmul.f32 0.5, %v475_v10 }
 0x179   : > { %v524_v15 = vpop.xlane.xlu1 %523  ;;  %v471_v16 = vpop.xlane.xlu0 %470 }
 0x17a   : > { %867 = vtanh.f32 %v505_v13  ;;  %v531_v17 = vadd.f32 %v770_v11, %v524_v15  ;;  %v476_v18 = vadd.f32 %v759_v12, %v471_v16  ;;  %v547_v15 = vld [vmem:[%s379_s20 + $0x10] sm:$0xff]  ;;  %v548_v16 = vld [vmem:[%s379_s20 + $0x18] sm:$0xff]  ;;  %s915_s20 = scalar_lea.vmem %s914_s25, 1024 }
 0x17b   : > { %869 = vtanh.f32 %v477_v14  ;;  %p917_p6 = scmp.lt.s32.totalorder %s915_s20, %s909_s12 }
 0x17c   : > { %v533_v20 = vmul.f32 0.5, %v531_v17  ;;  %v478_v21 = vmul.f32 0.5, %v476_v18 }
 0x17d   : > { %v499_v22 = vpop.xlane.xlu0 %498  ;;  %p918_p7 = por %p917_p6, %p916_p1 }
 0x17e   : > { %871 = vtanh.f32 %v533_v20  ;;  %v504_v23 = vadd.f32 %v765_v19, %v499_v22 }
 0x17f   : > { %873 = vtanh.f32 %v478_v21  ;;  %p919_p9 = pnand %p918_p7, %p912_p13 }
 0x180   : > { %v864_v26 = vpop.eup %863  ;;  %v506_v27 = vmul.f32 0.5, %v504_v23 }
 0x181   : > { %v866_v29 = vpop.eup %865  ;;  %v527_v30 = vpop.xlane.xlu0 %526  ;;  %v456_v31 = vmul.f32 %v864_v26, %v454_v24 }
 0x182   : > { %875 = vtanh.f32 %v506_v27  ;;  %v532_v32 = vadd.f32 %v771_v25, %v527_v30  ;;  %v455_v33 = vmul.f32 %v866_v29, %v454_v24 }
 0x183   : > { %v460_v35 = vadd.f32 %v458_v28, %v456_v31 }
 0x184   : > { %v868_v37 = vpop.eup %867  ;;  %v534_v38 = vmul.f32 0.5, %v532_v32  ;;  %v459_v39 = vadd.f32 %v458_v28, %v455_v33 }
 0x185   : > { %v870_v41 = vpop.eup %869  ;;  %556 = vperm.xlu0 %861, %v460_v35   ;;  %v511_v42 = vmul.f32 %v868_v37, %v510_v34 }
 0x186   : > { %877 = vtanh.f32 %v534_v38  ;;  %551 = vperm.xlu1 %862, %v459_v39   ;;  %v483_v44 = vmul.f32 %v870_v41, %v482_v36 }
 0x187   : > { %v515_v46 = vadd.f32 %v514_v40, %v511_v42 }
 0x188   : > { %v872_v47 = vpop.eup %871  ;;  %v487_v48 = vadd.f32 %v486_v43, %v483_v44 }
 0x189   : > { %v874_v50 = vpop.eup %873  ;;  %565 = vperm.xlu0 %861, %v515_v46   ;;  %v539_v51 = vmul.f32 %v872_v47, %v538_v45 }
 0x18a   : > { %579 = vperm.xlu1 %862, %v487_v48   ;;  %v484_v52 = vmul.f32 %v874_v50, %v482_v36 }
 0x18b   : > { %v543_v53 = vadd.f32 %v542_v49, %v539_v51 }
 0x18c   : > { %v876_v54 = vpop.eup %875  ;;  %v488_v55 = vadd.f32 %v486_v43, %v484_v52 }
 0x18d   : > { %593 = vperm.xlu0 %861, %v543_v53   ;;  %v512_v56 = vmul.f32 %v876_v54, %v510_v34 }
 0x18e   : > { %584 = vperm.xlu1 %862, %v488_v55  }
 0x18f   : > { %v516_v57 = vadd.f32 %v514_v40, %v512_v56 }
 0x190   : > { %v878_v58 = vpop.eup %877 }
 0x191   : > { %v540_v59 = vmul.f32 %v878_v58, %v538_v45 }
 0x192   : > { %570 = vperm.xlu1 %862, %v516_v57  }
 0x193   : > { %v544_v60 = vadd.f32 %v542_v49, %v540_v59 }
 0x196   : > { %598 = vperm.xlu1 %862, %v544_v60  }
 0x204   : > { %v557_v61 = vpop.permute.xlu0 %556 }
 0x205   : > { %v552_v62 = vpop.permute.xlu1 %551  ;;  %v561_v18 = vmul.f32 %v557_v61, %v547_v15  ;;  %v562_v19 = vmul.f32 %v557_v61, %v548_v16 }
 0x206   : > { %v559_v3 = vmul.f32 %v552_v62, %v545_v63  ;;  %v560_v4 = vmul.f32 %v552_v62, %v546_v0 }
 0x208   : > { %v566_v1 = vpop.permute.xlu0 %565 }
 0x209   : > { %v580_v2 = vpop.permute.xlu1 %579  ;;  %v573_v8 = vadd.f32 %v566_v1, %v559_v3  ;;  %v574_v9 = vadd.f32 %v566_v1, %v560_v4 }
 0x20a   : > { %v587_v5 = vmul.f32 %v580_v2, %v545_v63  ;;  %v588_v6 = vmul.f32 %v580_v2, %v546_v0 }
 0x20c   : > { %v594_v7 = vpop.permute.xlu0 %593 }
 0x20d   : > { %v585_v10 = vpop.permute.xlu1 %584  ;;  %v601_v11 = vadd.f32 %v594_v7, %v587_v5  ;;  %v602_v12 = vadd.f32 %v594_v7, %v588_v6 }
 0x20e   : > { %v589_v20 = vmul.f32 %v585_v10, %v547_v15  ;;  %v590_v21 = vmul.f32 %v585_v10, %v548_v16 }
 0x20f   : > { %v605_v13 = vmax.f32 %v573_v8, %v601_v11  ;;  %v606_v14 = vmax.f32 %v574_v9, %v602_v12 }
 0x211   : > { %609 = vst [vmem:[%s365_s19] sm:$0xff] %v605_v13  ;;  %610 = vst [vmem:[%s365_s19 + $0x8] sm:$0xff] %v606_v14  ;;  %v571_v17 = vpop.permute.xlu1 %570 }
 0x212   : > { %v575_v23 = vadd.f32 %v571_v17, %v561_v18  ;;  %v576_v24 = vadd.f32 %v571_v17, %v562_v19 }
 0x215   : > { %v599_v22 = vpop.permute.xlu1 %598 }
 0x216   : > { %v603_v25 = vadd.f32 %v599_v22, %v589_v20  ;;  %v604_v26 = vadd.f32 %v599_v22, %v590_v21 }
 0x218   : > { %v607_v27 = vmax.f32 %v575_v23, %v603_v25  ;;  %v608_v28 = vmax.f32 %v576_v24, %v604_v26 }
 0x21a   : > { %611 = vst [vmem:[%s365_s19 + $0x10] sm:$0xff] %v607_v27  ;;  %612 = vst [vmem:[%s365_s19 + $0x18] sm:$0xff] %v608_v28 }
 0x21b   : > { %922 = shalt.err (!%p919_p9)
}
 0x21c   : > { %s923_s11 = scalar_lea.hbm %s1264_s26, 512  ;;  %s927_s21 = scalar_lea.hbm %s1322_s8, 1024 }
 0x21d   : > { %p924_p12 = scmp.ne.s32.totalorder %s1264_s26, %s923_s11  ;;  %p928_p3 = scmp.lt.u32.totalorder %s1264_s26, %s1322_s8 }
 0x21e   : > { %p929_p5 = scmp.lt.u32.totalorder %s927_s21, %s923_s11  ;;  %p931_p8 = scmp.lt.u32.totalorder %s923_s11, %s1264_s26 }
 0x21f   : > { %p925_p0 = pnand %p924_p12, %p1334_p10 }
 0x220   : > { %p930_p4 = por %p929_p5, %p928_p3 }
 0x221   : > { %p926_p2 = pneg %p925_p0 }
 0x222   : > { %p932_p11 = por %p931_p8, %p930_p4 }
 0x224   : > { %p933_p13 = pnand %p932_p11, %p926_p2 }
 0x226   : > { %936 = shalt.err (!%p933_p13)
}
 0x227   : > { %s1001_s12 = smov 256   ;;  %s1002_s14 = smov 16  }
 0x228   : > { %790 = dma.vmem_to_hbm [thread:$0]  (%p1334_p10), %s1259_s22, 512, %s1264_s26, %s1268_s30, %s1001_s12, %s1001_s12, %s1002_s14  }
 0x229 PF: > { %p807_p1 = scmp.ge.s32.totalorder %s995_s10, 2  ;;  %s644_s25 = sand.u32 1, %s975_s27  }
 0x22a   : > { %p1335_p6 = scmp.ne.s32.totalorder %s1328_s17, 0  ;;  %s645_s20 = scalar_lea.sflag [#allocation3], %s644_s25 }
 0x22c   : > { %p800_p7 = pnand %p807_p1, %p1335_p6 }
 0x22e   : > { %970 = dma.done.wait (!%p800_p7), %s645_s20, 512  }
 0x22f   : > { %972 = vsyncadd (!%p800_p7), %s645_s20, 4294966784  ;;  %s23_s10 = sadd.s32 1, %s995_s10   ;;  %s1336_s27 = smov %s979_s28 }
 0x230   : > { %p20_p9 = scmp.ge.s32.totalorder %s23_s10, 4   ;;  %s1337_s28 = smov %s983_s29 }
 0x231   : > { %s1338_s29 = smov %s1101_s18  ;;  %s1339_s30 = smov %s991_s9 }
 0x232   : > { %s1340_s9 = smov %s1342_s13  ;;  %22 = sbr.rel (!%p20_p9) target bundleno = 6 (0x6), region = 105 }
 0x239   :  { %650 = vsyncpa [#allocation3], 1 }
 0x23a   :  { %652 = vsyncpa [#allocation3 + $0x1], 1 }
 0x23b   :  { %653 = vsyncpa [#allocation4], 1 }
 0x23c   :  { %655 = vsyncpa [#allocation4 + $0x1], 1 }
 0x23d   :  { %656 = vsyncpa [#allocation6], 1 }

</bundles_post_ra>
